<compile_context>
chip_gen: v6e
topology: v6e:2x2x1
jax: 0.10.0
libtpu: 0.0.40
codegen_flags: <defaults>
</compile_context>

<pallas_src>
import functools

import jax
import jax.numpy as jnp
from jax.experimental import pallas as pl
from jax.experimental.pallas import tpu as pltpu


def _ffn_kernel(x_ref, w1_ref, b1_ref, w2_ref, b2_ref, g_ref, beta_ref, out_ref,
                *, pre_lnorm, eps, matmul_dtype):
    # x_ref:   [TM, D]  token tile        w1_ref: [D, F]   w2_ref: [F, D]
    # b1_ref:  [1, F]   b2_ref: [1, D]    g_ref/beta_ref: [1, D]  (LayerNorm)
    x = x_ref[...].astype(jnp.float32)
    gamma = g_ref[...].astype(jnp.float32)
    beta = beta_ref[...].astype(jnp.float32)

    def layer_norm(v):
        mu = jnp.mean(v, axis=-1, keepdims=True)
        var = jnp.mean(jnp.square(v - mu), axis=-1, keepdims=True)
        return (v - mu) * jax.lax.rsqrt(var + eps) * gamma + beta

    h_in = layer_norm(x) if pre_lnorm else x

    # GEMM 1: bf16 x bf16 on the MXU, f32 accumulation; then bias + ReLU in f32.
    h = jnp.dot(h_in.astype(matmul_dtype), w1_ref[...],
                preferred_element_type=jnp.float32)
    h = jnp.maximum(h + b1_ref[...].astype(jnp.float32), 0.0)
    # (dropout: identity in eval mode)

    # GEMM 2: carry the hidden activation as bf16 into the MXU.
    core = jnp.dot(h.astype(matmul_dtype), w2_ref[...],
                   preferred_element_type=jnp.float32)
    core = core + b2_ref[...].astype(jnp.float32)

    y = x + core                      # residual in f32
    if not pre_lnorm:
        y = layer_norm(y)
    out_ref[...] = y.astype(out_ref.dtype)


def _vmem_budget_bytes():
    """~75% of per-core VMEM (v5e/v6e: 128 MiB, v7x: 64 MiB), capped at 96 MiB."""
    try:
        cap = int(pltpu.get_tpu_info().vmem_capacity_bytes)
    except Exception:
        cap = 64 << 20          # assume the tightest case (v7x per-TensorCore)
    return min((cap * 3) // 4, 96 << 20)


def _per_block_vmem(block_m, d_model, d_inner, x_itemsize, w_itemsize):
    return int(
        2 * block_m * d_model * x_itemsize      # double-buffered input tile
        + 2 * block_m * d_model * x_itemsize    # double-buffered output tile
        + block_m * d_inner * 4                 # f32 GEMM1 result / ReLU
        + block_m * d_inner * w_itemsize        # bf16 copy fed to GEMM2
        + 2 * block_m * d_model * 4)            # f32 residual / LN temporaries


def _pick_block_m(n_rows, d_model, d_inner, x_itemsize, w_itemsize, budget):
    # Single-buffered resident weights + small per-channel params.
    resident = 2 * d_model * d_inner * w_itemsize + (d_inner + 3 * d_model) * 4
    block_m = 8
    for bm in (1024, 768, 512, 384, 256, 128, 64, 32, 16, 8):
        if resident + _per_block_vmem(bm, d_model, d_inner,
                                      x_itemsize, w_itemsize) <= budget:
            block_m = bm
            break
    # If the whole token axis fits in one block, use it exactly (no padding,
    # and "equal to full dim" always satisfies the sublane rule).
    return block_m if block_m < n_rows else n_rows


def positionwise_ff(inp, params, *, pre_lnorm=False, eps=1e-5,
                    matmul_dtype=jnp.bfloat16):
    """Pallas equivalent of PositionwiseFF.forward(inp) in eval mode.

    inp:     [..., d_model]  (e.g. [seq, bsz, d_model])
    params:  dict with w1 [D,F], b1 [F], w2 [F,D], b2 [D], gamma [D], beta [D]
    """
    d_model = inp.shape[-1]
    d_inner = params["w1"].shape[1]
    orig_shape = inp.shape
    out_dtype = inp.dtype

    x = inp.reshape(-1, d_model)
    n = x.shape[0]

    x_itemsize = jnp.dtype(inp.dtype).itemsize
    w_itemsize = jnp.dtype(matmul_dtype).itemsize
    budget = _vmem_budget_bytes()
    block_m = _pick_block_m(n, d_model, d_inner, x_itemsize, w_itemsize, budget)

    n_blocks = pl.cdiv(n, block_m)
    n_pad = n_blocks * block_m
    if n_pad != n:
        # TODO(synk): masked last block would avoid this extra HBM pass.
        x = jnp.pad(x, ((0, n_pad - n), (0, 0)))

    # Weights in the MXU dtype (halves DMA + VMEM); small params stay f32.
    w1 = params["w1"].astype(matmul_dtype)
    w2 = params["w2"].astype(matmul_dtype)
    b1 = params["b1"].astype(jnp.float32).reshape(1, d_inner)
    b2 = params["b2"].astype(jnp.float32).reshape(1, d_model)
    gamma = params["gamma"].astype(jnp.float32).reshape(1, d_model)
    beta = params["beta"].astype(jnp.float32).reshape(1, d_model)

    cost = pl.CostEstimate(
        flops=int(4 * n * d_model * d_inner),                  # two GEMMs
        transcendentals=int(n),                                # rsqrt per row (LN)
        bytes_accessed=int(n * d_model * x_itemsize            # read x
                           + n * d_model * jnp.dtype(out_dtype).itemsize  # write out
                           + 2 * d_model * d_inner * w_itemsize),         # weights once
    )

    kernel = functools.partial(_ffn_kernel, pre_lnorm=pre_lnorm, eps=eps,
                               matmul_dtype=matmul_dtype)

    def make_call(single_buffer_weights):
        resident_kw = ({"pipeline_mode": pl.Buffered(1)}
                       if single_buffer_weights else {})
        return pl.pallas_call(
            kernel,
            out_shape=jax.ShapeDtypeStruct((n_pad, d_model), out_dtype),
            grid=(n_pad // block_m,),
            in_specs=[
                pl.BlockSpec((block_m, d_model), lambda i: (i, 0)),                 # x tile
                pl.BlockSpec((d_model, d_inner), lambda i: (0, 0), **resident_kw),  # w1
                pl.BlockSpec((1, d_inner),       lambda i: (0, 0), **resident_kw),  # b1
                pl.BlockSpec((d_inner, d_model), lambda i: (0, 0), **resident_kw),  # w2
                pl.BlockSpec((1, d_model),       lambda i: (0, 0), **resident_kw),  # b2
                pl.BlockSpec((1, d_model),       lambda i: (0, 0), **resident_kw),  # gamma
                pl.BlockSpec((1, d_model),       lambda i: (0, 0), **resident_kw),  # beta
            ],
            out_specs=pl.BlockSpec((block_m, d_model), lambda i: (i, 0)),
            compiler_params=pltpu.CompilerParams(
                dimension_semantics=("parallel",),   # shard token axis across TCs
                vmem_limit_bytes=int(budget),
            ),
            cost_estimate=cost,
        )

    args = (x, w1, b1, w2, b2, gamma, beta)
    try:
        out = make_call(single_buffer_weights=True)(*args)
    except Exception:
        # Fallback for jax versions without BlockSpec.pipeline_mode support:
        # default (double-buffered) pipelining for the grid-invariant operands.
        out = make_call(single_buffer_weights=False)(*args)

    if n_pad != n:
        out = out[:n]
    return out.reshape(orig_shape)


def _reference_ff(inp, params, pre_lnorm, eps=1e-5, matmul_dtype=jnp.bfloat16):
    """Pure-JAX reference using the same bf16-matmul / f32-accumulate recipe."""
    x = inp.astype(jnp.float32)
    gamma = params["gamma"].astype(jnp.float32)
    beta = params["beta"].astype(jnp.float32)

    def ln(v):
        mu = v.mean(-1, keepdims=True)
        var = ((v - mu) ** 2).mean(-1, keepdims=True)
        return (v - mu) / jnp.sqrt(var + eps) * gamma + beta

    w1 = params["w1"].astype(matmul_dtype)
    w2 = params["w2"].astype(matmul_dtype)
    h_in = ln(x) if pre_lnorm else x
    h = jnp.dot(h_in.astype(matmul_dtype), w1, preferred_element_type=jnp.float32)
    h = jnp.maximum(h + params["b1"].astype(jnp.float32), 0.0)
    core = jnp.dot(h.astype(matmul_dtype), w2, preferred_element_type=jnp.float32)
    core = core + params["b2"].astype(jnp.float32)
    if pre_lnorm:
        return core + x
    return ln(x + core)


if __name__ == "__main__":
    seq, bsz = 8, 2
    d_model, d_inner = 32, 64

    key = jax.random.PRNGKey(0)
    k_x, k_w1, k_b1, k_w2, k_b2 = jax.random.split(key, 5)

    inp = jax.random.normal(k_x, (seq, bsz, d_model), dtype=jnp.float32)
    params = {
        "w1": jax.random.normal(k_w1, (d_model, d_inner), jnp.float32) * 0.05,
        "b1": jax.random.normal(k_b1, (d_inner,), jnp.float32) * 0.05,
        "w2": jax.random.normal(k_w2, (d_inner, d_model), jnp.float32) * 0.05,
        "b2": jax.random.normal(k_b2, (d_model,), jnp.float32) * 0.05,
        "gamma": jnp.ones((d_model,), jnp.float32),
        "beta": jnp.zeros((d_model,), jnp.float32),
    }

    ok = True
    for pre_lnorm in (False, True):
        out = positionwise_ff(inp, params, pre_lnorm=pre_lnorm)
        out = jax.block_until_ready(out)
        ref = _reference_ff(inp, params, pre_lnorm)
        assert out.shape == (seq, bsz, d_model)
        if not jnp.allclose(out, ref, atol=2e-3, rtol=2e-3):
            ok = False
            print(f"MISMATCH pre_lnorm={pre_lnorm}: "
                  f"max_err={float(jnp.max(jnp.abs(out - ref)))}")

    if ok:
        print("KERNEL_OK")
</pallas_src>

<mosaic_0001>
module attributes {stable_mosaic.version = 11 : i64} {
  func.func @_ffn_kernel(%arg0: i32, %arg1: memref<16x32xf32, #tpu.memory_space<vmem>>, %arg2: memref<32x64xbf16, #tpu.memory_space<vmem>>, %arg3: memref<1x64xf32, #tpu.memory_space<vmem>>, %arg4: memref<64x32xbf16, #tpu.memory_space<vmem>>, %arg5: memref<1x32xf32, #tpu.memory_space<vmem>>, %arg6: memref<1x32xf32, #tpu.memory_space<vmem>>, %arg7: memref<1x32xf32, #tpu.memory_space<vmem>>, %arg8: memref<16x32xf32, #tpu.memory_space<vmem>>) attributes {dimension_semantics = [#tpu.dimension_semantics<parallel>], iteration_bounds = array<i64: 1>, scalar_prefetch = 0 : i64, scratch_operands = 0 : i64, tpu.core_type = #tpu.core_type<tc>, window_params = [{transform_indices = @transform_0, window_bounds = array<i64: 16, 32>}, {pipeline_mode = #tpu.pipeline_mode<synchronous>, transform_indices = @transform_1, window_bounds = array<i64: 32, 64>}, {pipeline_mode = #tpu.pipeline_mode<synchronous>, transform_indices = @transform_2, window_bounds = array<i64: 1, 64>}, {pipeline_mode = #tpu.pipeline_mode<synchronous>, transform_indices = @transform_3, window_bounds = array<i64: 64, 32>}, {pipeline_mode = #tpu.pipeline_mode<synchronous>, transform_indices = @transform_4, window_bounds = array<i64: 1, 32>}, {pipeline_mode = #tpu.pipeline_mode<synchronous>, transform_indices = @transform_5, window_bounds = array<i64: 1, 32>}, {pipeline_mode = #tpu.pipeline_mode<synchronous>, transform_indices = @transform_6, window_bounds = array<i64: 1, 32>}, {transform_indices = @transform_7, window_bounds = array<i64: 16, 32>}]} {
    %c0 = arith.constant 0 : index
    %c0_0 = arith.constant 0 : index
    %0 = vector.load %arg1[%c0, %c0_0] : memref<16x32xf32, #tpu.memory_space<vmem>>, vector<16x32xf32>
    %c0_1 = arith.constant 0 : index
    %c0_2 = arith.constant 0 : index
    %1 = vector.load %arg6[%c0_1, %c0_2] : memref<1x32xf32, #tpu.memory_space<vmem>>, vector<1x32xf32>
    %c0_3 = arith.constant 0 : index
    %c0_4 = arith.constant 0 : index
    %2 = vector.load %arg7[%c0_3, %c0_4] : memref<1x32xf32, #tpu.memory_space<vmem>>, vector<1x32xf32>
    %3 = arith.truncf %0 : vector<16x32xf32> to vector<16x32xbf16>
    %c0_5 = arith.constant 0 : index
    %c0_6 = arith.constant 0 : index
    %4 = vector.load %arg2[%c0_5, %c0_6] : memref<32x64xbf16, #tpu.memory_space<vmem>>, vector<32x64xbf16>
    %cst = arith.constant dense<0.000000e+00> : vector<16x64xf32>
    %5 = tpu.matmul %3, %4, %cst {dimension_numbers = #tpu.dot_dimension_numbers<[1], [0], [0], [1], [0, 0, 1, 1], [], []>} : vector<16x32xbf16>, vector<32x64xbf16>, vector<16x64xf32> -> vector<16x64xf32>
    %c0_7 = arith.constant 0 : index
    %c0_8 = arith.constant 0 : index
    %6 = vector.load %arg3[%c0_7, %c0_8] : memref<1x64xf32, #tpu.memory_space<vmem>>, vector<1x64xf32>
    %7 = vector.broadcast %6 : vector<1x64xf32> to vector<16x64xf32>
    %8 = arith.addf %5, %7 : vector<16x64xf32>
    %cst_9 = arith.constant 0.000000e+00 : f32
    %9 = vector.broadcast %cst_9 : f32 to vector<16x64xf32>
    %10 = arith.maximumf %8, %9 : vector<16x64xf32>
    %11 = arith.truncf %10 : vector<16x64xf32> to vector<16x64xbf16>
    %c0_10 = arith.constant 0 : index
    %c0_11 = arith.constant 0 : index
    %12 = vector.load %arg4[%c0_10, %c0_11] : memref<64x32xbf16, #tpu.memory_space<vmem>>, vector<64x32xbf16>
    %cst_12 = arith.constant dense<0.000000e+00> : vector<16x32xf32>
    %13 = tpu.matmul %11, %12, %cst_12 {dimension_numbers = #tpu.dot_dimension_numbers<[1], [0], [0], [1], [0, 0, 1, 1], [], []>} : vector<16x64xbf16>, vector<64x32xbf16>, vector<16x32xf32> -> vector<16x32xf32>
    %c0_13 = arith.constant 0 : index
    %c0_14 = arith.constant 0 : index
    %14 = vector.load %arg5[%c0_13, %c0_14] : memref<1x32xf32, #tpu.memory_space<vmem>>, vector<1x32xf32>
    %15 = vector.broadcast %14 : vector<1x32xf32> to vector<16x32xf32>
    %16 = arith.addf %13, %15 : vector<16x32xf32>
    %17 = arith.addf %0, %16 : vector<16x32xf32>
    %cst_15 = arith.constant dense<0.000000e+00> : vector<16xf32>
    %18 = vector.multi_reduction <add>, %17, %cst_15 [1] : vector<16x32xf32> to vector<16xf32>
    %19 = vector.shape_cast %18 : vector<16xf32> to vector<16x1xf32>
    %cst_16 = arith.constant 3.200000e+01 : f32
    %20 = vector.broadcast %cst_16 : f32 to vector<16x1xf32>
    %21 = arith.divf %19, %20 : vector<16x1xf32>
    %22 = vector.broadcast %21 : vector<16x1xf32> to vector<16x32xf32>
    %23 = arith.subf %17, %22 : vector<16x32xf32>
    %24 = arith.mulf %23, %23 : vector<16x32xf32>
    %cst_17 = arith.constant dense<0.000000e+00> : vector<16xf32>
    %25 = vector.multi_reduction <add>, %24, %cst_17 [1] : vector<16x32xf32> to vector<16xf32>
    %26 = vector.shape_cast %25 : vector<16xf32> to vector<16x1xf32>
    %cst_18 = arith.constant 3.200000e+01 : f32
    %27 = vector.broadcast %cst_18 : f32 to vector<16x1xf32>
    %28 = arith.divf %26, %27 : vector<16x1xf32>
    %29 = vector.broadcast %21 : vector<16x1xf32> to vector<16x32xf32>
    %30 = arith.subf %17, %29 : vector<16x32xf32>
    %cst_19 = arith.constant 9.99999974E-6 : f32
    %31 = vector.broadcast %cst_19 : f32 to vector<16x1xf32>
    %32 = arith.addf %28, %31 : vector<16x1xf32>
    %33 = math.rsqrt %32 : vector<16x1xf32>
    %34 = vector.broadcast %33 : vector<16x1xf32> to vector<16x32xf32>
    %35 = arith.mulf %30, %34 : vector<16x32xf32>
    %36 = vector.broadcast %1 : vector<1x32xf32> to vector<16x32xf32>
    %37 = arith.mulf %35, %36 : vector<16x32xf32>
    %38 = vector.broadcast %2 : vector<1x32xf32> to vector<16x32xf32>
    %39 = arith.addf %37, %38 : vector<16x32xf32>
    %c0_20 = arith.constant 0 : index
    %c0_21 = arith.constant 0 : index
    %40 = vector.load %arg8[%c0_20, %c0_21] : memref<16x32xf32, #tpu.memory_space<vmem>>, vector<16x32xf32>
    tpu.vector_store %arg8[%c0_20, %c0_21], %39 {strides = array<i32>} : memref<16x32xf32, #tpu.memory_space<vmem>>, vector<16x32xf32>,
    return
  }
  func.func @transform_0(%arg0: i32) -> (i32, i32) {
    %c0_i32 = arith.constant 0 : i32
    %c0_i32_0 = arith.constant 0 : i32
    return %arg0, %c0_i32 : i32, i32
  }
  func.func @transform_1(%arg0: i32) -> (i32, i32) {
    %c0_i32 = arith.constant 0 : i32
    %c0_i32_0 = arith.constant 0 : i32
    %c0_i32_1 = arith.constant 0 : i32
    return %c0_i32, %c0_i32_0 : i32, i32
  }
  func.func @transform_2(%arg0: i32) -> (i32, i32) {
    %c0_i32 = arith.constant 0 : i32
    %c0_i32_0 = arith.constant 0 : i32
    %c0_i32_1 = arith.constant 0 : i32
    return %c0_i32, %c0_i32_0 : i32, i32
  }
  func.func @transform_3(%arg0: i32) -> (i32, i32) {
    %c0_i32 = arith.constant 0 : i32
    %c0_i32_0 = arith.constant 0 : i32
    %c0_i32_1 = arith.constant 0 : i32
    return %c0_i32, %c0_i32_0 : i32, i32
  }
  func.func @transform_4(%arg0: i32) -> (i32, i32) {
    %c0_i32 = arith.constant 0 : i32
    %c0_i32_0 = arith.constant 0 : i32
    %c0_i32_1 = arith.constant 0 : i32
    return %c0_i32, %c0_i32_0 : i32, i32
  }
  func.func @transform_5(%arg0: i32) -> (i32, i32) {
    %c0_i32 = arith.constant 0 : i32
    %c0_i32_0 = arith.constant 0 : i32
    %c0_i32_1 = arith.constant 0 : i32
    return %c0_i32, %c0_i32_0 : i32, i32
  }
  func.func @transform_6(%arg0: i32) -> (i32, i32) {
    %c0_i32 = arith.constant 0 : i32
    %c0_i32_0 = arith.constant 0 : i32
    %c0_i32_1 = arith.constant 0 : i32
    return %c0_i32, %c0_i32_0 : i32, i32
  }
  func.func @transform_7(%arg0: i32) -> (i32, i32) {
    %c0_i32 = arith.constant 0 : i32
    %c0_i32_0 = arith.constant 0 : i32
    return %arg0, %c0_i32 : i32, i32
  }
}

module attributes {stable_mosaic.version = 11 : i64} {
  func.func @_ffn_kernel(%arg0: i32, %arg1: memref<16x32xf32, #tpu.memory_space<vmem>>, %arg2: memref<32x64xbf16, #tpu.memory_space<vmem>>, %arg3: memref<1x64xf32, #tpu.memory_space<vmem>>, %arg4: memref<64x32xbf16, #tpu.memory_space<vmem>>, %arg5: memref<1x32xf32, #tpu.memory_space<vmem>>, %arg6: memref<1x32xf32, #tpu.memory_space<vmem>>, %arg7: memref<1x32xf32, #tpu.memory_space<vmem>>, %arg8: memref<16x32xf32, #tpu.memory_space<vmem>>) attributes {dimension_semantics = [#tpu.dimension_semantics<parallel>], iteration_bounds = array<i64: 1>, scalar_prefetch = 0 : i64, scratch_operands = 0 : i64, tpu.core_type = #tpu.core_type<tc>, window_params = [{transform_indices = @transform_0, window_bounds = array<i64: 16, 32>}, {pipeline_mode = #tpu.pipeline_mode<synchronous>, transform_indices = @transform_1, window_bounds = array<i64: 32, 64>}, {pipeline_mode = #tpu.pipeline_mode<synchronous>, transform_indices = @transform_2, window_bounds = array<i64: 1, 64>}, {pipeline_mode = #tpu.pipeline_mode<synchronous>, transform_indices = @transform_3, window_bounds = array<i64: 64, 32>}, {pipeline_mode = #tpu.pipeline_mode<synchronous>, transform_indices = @transform_4, window_bounds = array<i64: 1, 32>}, {pipeline_mode = #tpu.pipeline_mode<synchronous>, transform_indices = @transform_5, window_bounds = array<i64: 1, 32>}, {pipeline_mode = #tpu.pipeline_mode<synchronous>, transform_indices = @transform_6, window_bounds = array<i64: 1, 32>}, {transform_indices = @transform_7, window_bounds = array<i64: 16, 32>}]} {
    %c0 = arith.constant 0 : index
    %c0_0 = arith.constant 0 : index
    %0 = vector.load %arg1[%c0, %c0_0] : memref<16x32xf32, #tpu.memory_space<vmem>>, vector<16x32xf32>
    %c0_1 = arith.constant 0 : index
    %c0_2 = arith.constant 0 : index
    %1 = vector.load %arg6[%c0_1, %c0_2] : memref<1x32xf32, #tpu.memory_space<vmem>>, vector<1x32xf32>
    %c0_3 = arith.constant 0 : index
    %c0_4 = arith.constant 0 : index
    %2 = vector.load %arg7[%c0_3, %c0_4] : memref<1x32xf32, #tpu.memory_space<vmem>>, vector<1x32xf32>
    %3 = arith.truncf %0 : vector<16x32xf32> to vector<16x32xbf16>
    %c0_5 = arith.constant 0 : index
    %c0_6 = arith.constant 0 : index
    %4 = vector.load %arg2[%c0_5, %c0_6] : memref<32x64xbf16, #tpu.memory_space<vmem>>, vector<32x64xbf16>
    %cst = arith.constant dense<0.000000e+00> : vector<16x64xf32>
    %5 = tpu.matmul %3, %4, %cst {dimension_numbers = #tpu.dot_dimension_numbers<[1], [0], [0], [1], [0, 0, 1, 1], [], []>} : vector<16x32xbf16>, vector<32x64xbf16>, vector<16x64xf32> -> vector<16x64xf32>
    %c0_7 = arith.constant 0 : index
    %c0_8 = arith.constant 0 : index
    %6 = vector.load %arg3[%c0_7, %c0_8] : memref<1x64xf32, #tpu.memory_space<vmem>>, vector<1x64xf32>
    %7 = vector.broadcast %6 : vector<1x64xf32> to vector<16x64xf32>
    %8 = arith.addf %5, %7 : vector<16x64xf32>
    %cst_9 = arith.constant 0.000000e+00 : f32
    %9 = vector.broadcast %cst_9 : f32 to vector<16x64xf32>
    %10 = arith.maximumf %8, %9 : vector<16x64xf32>
    %11 = arith.truncf %10 : vector<16x64xf32> to vector<16x64xbf16>
    %c0_10 = arith.constant 0 : index
    %c0_11 = arith.constant 0 : index
    %12 = vector.load %arg4[%c0_10, %c0_11] : memref<64x32xbf16, #tpu.memory_space<vmem>>, vector<64x32xbf16>
    %cst_12 = arith.constant dense<0.000000e+00> : vector<16x32xf32>
    %13 = tpu.matmul %11, %12, %cst_12 {dimension_numbers = #tpu.dot_dimension_numbers<[1], [0], [0], [1], [0, 0, 1, 1], [], []>} : vector<16x64xbf16>, vector<64x32xbf16>, vector<16x32xf32> -> vector<16x32xf32>
    %c0_13 = arith.constant 0 : index
    %c0_14 = arith.constant 0 : index
    %14 = vector.load %arg5[%c0_13, %c0_14] : memref<1x32xf32, #tpu.memory_space<vmem>>, vector<1x32xf32>
    %15 = vector.broadcast %14 : vector<1x32xf32> to vector<16x32xf32>
    %16 = arith.addf %13, %15 : vector<16x32xf32>
    %17 = arith.addf %0, %16 : vector<16x32xf32>
    %cst_15 = arith.constant dense<0.000000e+00> : vector<16xf32>
    %18 = vector.multi_reduction <add>, %17, %cst_15 [1] : vector<16x32xf32> to vector<16xf32>
    %19 = vector.shape_cast %18 : vector<16xf32> to vector<16x1xf32>
    %cst_16 = arith.constant 3.200000e+01 : f32
    %20 = vector.broadcast %cst_16 : f32 to vector<16x1xf32>
    %21 = arith.divf %19, %20 : vector<16x1xf32>
    %22 = vector.broadcast %21 : vector<16x1xf32> to vector<16x32xf32>
    %23 = arith.subf %17, %22 : vector<16x32xf32>
    %24 = arith.mulf %23, %23 : vector<16x32xf32>
    %cst_17 = arith.constant dense<0.000000e+00> : vector<16xf32>
    %25 = vector.multi_reduction <add>, %24, %cst_17 [1] : vector<16x32xf32> to vector<16xf32>
    %26 = vector.shape_cast %25 : vector<16xf32> to vector<16x1xf32>
    %cst_18 = arith.constant 3.200000e+01 : f32
    %27 = vector.broadcast %cst_18 : f32 to vector<16x1xf32>
    %28 = arith.divf %26, %27 : vector<16x1xf32>
    %29 = vector.broadcast %21 : vector<16x1xf32> to vector<16x32xf32>
    %30 = arith.subf %17, %29 : vector<16x32xf32>
    %cst_19 = arith.constant 9.99999974E-6 : f32
    %31 = vector.broadcast %cst_19 : f32 to vector<16x1xf32>
    %32 = arith.addf %28, %31 : vector<16x1xf32>
    %33 = math.rsqrt %32 : vector<16x1xf32>
    %34 = vector.broadcast %33 : vector<16x1xf32> to vector<16x32xf32>
    %35 = arith.mulf %30, %34 : vector<16x32xf32>
    %36 = vector.broadcast %1 : vector<1x32xf32> to vector<16x32xf32>
    %37 = arith.mulf %35, %36 : vector<16x32xf32>
    %38 = vector.broadcast %2 : vector<1x32xf32> to vector<16x32xf32>
    %39 = arith.addf %37, %38 : vector<16x32xf32>
    %c0_20 = arith.constant 0 : index
    %c0_21 = arith.constant 0 : index
    %40 = vector.load %arg8[%c0_20, %c0_21] : memref<16x32xf32, #tpu.memory_space<vmem>>, vector<16x32xf32>
    tpu.vector_store %arg8[%c0_20, %c0_21], %39 {strides = array<i32>} : memref<16x32xf32, #tpu.memory_space<vmem>>, vector<16x32xf32>,
    return
  }
  func.func @transform_0(%arg0: i32) -> (i32, i32) {
    %c0_i32 = arith.constant 0 : i32
    %c0_i32_0 = arith.constant 0 : i32
    return %arg0, %c0_i32 : i32, i32
  }
  func.func @transform_1(%arg0: i32) -> (i32, i32) {
    %c0_i32 = arith.constant 0 : i32
    %c0_i32_0 = arith.constant 0 : i32
    %c0_i32_1 = arith.constant 0 : i32
    return %c0_i32, %c0_i32_0 : i32, i32
  }
  func.func @transform_2(%arg0: i32) -> (i32, i32) {
    %c0_i32 = arith.constant 0 : i32
    %c0_i32_0 = arith.constant 0 : i32
    %c0_i32_1 = arith.constant 0 : i32
    return %c0_i32, %c0_i32_0 : i32, i32
  }
  func.func @transform_3(%arg0: i32) -> (i32, i32) {
    %c0_i32 = arith.constant 0 : i32
    %c0_i32_0 = arith.constant 0 : i32
    %c0_i32_1 = arith.constant 0 : i32
    return %c0_i32, %c0_i32_0 : i32, i32
  }
  func.func @transform_4(%arg0: i32) -> (i32, i32) {
    %c0_i32 = arith.constant 0 : i32
    %c0_i32_0 = arith.constant 0 : i32
    %c0_i32_1 = arith.constant 0 : i32
    return %c0_i32, %c0_i32_0 : i32, i32
  }
  func.func @transform_5(%arg0: i32) -> (i32, i32) {
    %c0_i32 = arith.constant 0 : i32
    %c0_i32_0 = arith.constant 0 : i32
    %c0_i32_1 = arith.constant 0 : i32
    return %c0_i32, %c0_i32_0 : i32, i32
  }
  func.func @transform_6(%arg0: i32) -> (i32, i32) {
    %c0_i32 = arith.constant 0 : i32
    %c0_i32_0 = arith.constant 0 : i32
    %c0_i32_1 = arith.constant 0 : i32
    return %c0_i32, %c0_i32_0 : i32, i32
  }
  func.func @transform_7(%arg0: i32) -> (i32, i32) {
    %c0_i32 = arith.constant 0 : i32
    %c0_i32_0 = arith.constant 0 : i32
    return %arg0, %c0_i32 : i32, i32
  }
}

</mosaic_0001>

<bundles_post_ra>
// kernel: tpu_custom_call.1
= control target key start
LH: loop header
LB: loop body
LE: loop exit
PB: predicated region body
PF: predicated region fallthrough
CT: control target
= control target key end

     0   :  { %v328_v1 = vmov 0.0   ;;  %vm329_vm0 = vmmov 0   ;;  %vm56_vm1 = vcmask 261120   ;;  %s419_s0 = inlined_call_operand.vmem [shape: f32[16,32], index: 0, kind: input, shape index: {}]   ;;  %s420_s1 = inlined_call_operand.vmem [shape: bf16[32,64], index: 1, kind: input, shape index: {}]   ;;  %s421_s2 = inlined_call_operand.vmem [shape: f32[1,64], index: 2, kind: input, shape index: {}]   ;;  %s422_s3 = inlined_call_operand.vmem [shape: bf16[64,32], index: 3, kind: input, shape index: {}]   ;;  %s423_s4 = inlined_call_operand.vmem [shape: f32[1,32], index: 4, kind: input, shape index: {}]   ;;  %s424_s5 = inlined_call_operand.vmem [shape: f32[1,32], index: 5, kind: input, shape index: {}]   ;;  %s425_s6 = inlined_call_operand.vmem [shape: f32[1,32], index: 6, kind: input, shape index: {}]   ;;  %s426_s7 = inlined_call_operand.hbm [shape: f32[16,32], index: 7, kind: output, shape index: {}]  }
   0x1   :  { %v296_v0 = vld [vmem:[%s420_s1 + $0x8] sm:$0xff]   ;;  %271 = vmatprep.subr.bf16.mxu0 %v328_v1  ;;  %v297_v2 = vld [vmem:[%s420_s1] sm:$0xff]   ;;  %279 = vmatprep.subr.bf16.mxu1 %v328_v1  ;;  %v298_v5 = vld [vmem:[%s422_s3 + $0x18] sm:$0xff]  }
   0x2   :  { %272 = vmatpush3.bf16.msra.mxu0 %v296_v0  ;;  %275 = vmatprep.mubr.msk.bf16.mxu0 %vm329_vm0, %v328_v1  ;;  %v28_v3 = vld [vmem:[%s419_s0] sm:$0xff]  ;;  %v29_v4 = vld [vmem:[%s419_s0 + $0x8] sm:$0xff] }
   0x3   :  { %273 = vmatprep.subr.bf16.mxu0 %v328_v1  ;;  %287 = vmatprep.mubr.msk.bf16.mxu1 %vm329_vm0, %v328_v1  ;;  %v32_v6 = vpack.c.bf16 %v29_v4, %v28_v3 }
   0x4   :  { %280 = vmatpush3.bf16.msra.mxu1 %v298_v5 }
   0x5   :  { %281 = vmatprep.subr.bf16.mxu1 %v328_v1 }
   0x6   :  { %274 = vmatpush3.bf16.msra.mxu0 %v297_v2 }
   0x7   :  { %12 = vsyncpa [#allocation3], 0  ;;  %v299_v7 = vld [vmem:[%s422_s3 + $0x10] sm:$0xff]   ;;  %v300_v8 = vld [vmem:[%s422_s3 + $0x8] sm:$0xff]   ;;  %vm143_vm2 = vcmask 523264   ;;  %s330_s20 = smov [#allocation2]  }
   0x8   :  { %282 = vmatpush3.bf16.msra.mxu1 %v299_v7  ;;  %v301_v9 = vld [vmem:[%s422_s3] sm:$0xff]   ;;  %s240_s21 = sshll.u32 %s330_s20, 4  ;;  %s241_s21 = int_to_ptr.vmem [resolvable:$true] %s240_s21 }
   0x9   :  { %276 = vmatmul.mubr.msk.bf16.vlgmr.msra.gmra.mxu0 %vm56_vm1, %v32_v6  ;;  %283 = vmatprep.subr.bf16.mxu1 %v328_v1  ;;  %v251_v10 = vld [vmem:[%s421_s2] ss:$0 sm:$0xff]  ;;  %s306_s22 = scalar_lea.vmem %s241_s21, 256  ;;  %p311_p1 = scmp.lt.s32.totalorder %s241_s21, %s241_s21 }
   0xa   :  { %v255_v20 = vld [vmem:[%s423_s4] ss:$0 sm:$0xff]  ;;  %p307_p0 = scmp.ne.s32.totalorder %s241_s21, %s306_s22  ;;  %p312_p2 = scmp.lt.s32.totalorder %s306_s22, %s306_s22 }
   0xb   :  { %v261_v48 = vld [vmem:[%s424_s5] ss:$0 sm:$0xff] }
   0xc   :  { %284 = vmatpush3.bf16.msra.mxu1 %v300_v8  ;;  %v262_v50 = vld [vmem:[%s425_s6] ss:$0 sm:$0xff]  ;;  %p313_p3 = por %p312_p2, %p311_p1 }
   0xd   :  { %285 = vmatprep.subr.bf16.mxu1 %v328_v1 }
   0xe   :  { %p314_p4 = pnand %p313_p3, %p307_p0 }
  0x10   :  { %286 = vmatpush3.bf16.msra.mxu1 %v301_v9 }
  0xc9   :  { %v94_v11 = vpop.f32.mrf.mxu0 }
  0xca   :  { %v95_v13 = vadd.f32 %v251_v10, %v94_v11 }
  0xcb   :  { %v277_v12 = vpop.f32.mrf.mxu0 }
  0xcc   :  { %v101_v17 = vmax.f32 %v95_v13, 0.0 }
  0xcd   :  { %v97_v14 = vpop.f32.mrf.mxu0 }
  0xce   :  { %v98_v15 = vadd.f32 %v251_v10, %v97_v14 }
  0xcf   :  { %v278_v16 = vpop.f32.mrf.mxu0 }
  0xd0   :  { %v102_v18 = vmax.f32 %v98_v15, 0.0 }
  0xd2   :  { %v103_v19 = vpack.c.bf16 %v102_v18, %v101_v17 }
  0xd4   :  { %288 = vmatmul.mubr.msk.bf16.vlgmr.msra.gmra.mxu1 %vm143_vm2, %v103_v19 }
 0x194   :  { %v181_v21 = vpop.f32.mrf.mxu1 }
 0x195   :  { %v182_v22 = vadd.f32 %v255_v20, %v181_v21 }
 0x196   :  { %v289_v23 = vpop.f32.mrf.mxu1 }
 0x197   :  { %v188_v24 = vadd.f32 %v182_v22, %v28_v3 }
 0x198   :  { %v184_v25 = vpop.f32.mrf.mxu1 }
 0x199   :  { %v185_v26 = vadd.f32 %v255_v20, %v184_v25  ;;  %v190_v27 = vsel %vm56_vm1, %v188_v24, 0.0 }
 0x19a   :  { %191 = vadd.xlane.f32.xlu0 %v190_v27  ;;  %v290_v28 = vpop.f32.mrf.mxu1 }
 0x19b   :  { %v189_v29 = vadd.f32 %v185_v26, %v29_v4 }
 0x19d   :  { %v193_v30 = vsel %vm56_vm1, %v189_v29, 0.0 }
 0x19e   :  { %194 = vadd.xlane.f32.xlu0 %v193_v30 }
 0x223   :  { %v192_v31 = vpop.xlane.xlu0 %191 }
 0x224   :  { %v197_v32 = vmul.f32 0.03125, %v192_v31 }
 0x226   :  { %v199_v33 = vsub.f32 %v188_v24, %v197_v32 }
 0x227   :  { %v195_v34 = vpop.xlane.xlu0 %194 }
 0x228   :  { %v198_v35 = vmul.f32 0.03125, %v195_v34  ;;  %v201_v36 = vmul.f32 %v199_v33, %v199_v33 }
 0x22a   :  { %v200_v37 = vsub.f32 %v189_v29, %v198_v35  ;;  %v203_v38 = vsel %vm56_vm1, %v201_v36, 0.0 }
 0x22b   :  { %204 = vadd.xlane.f32.xlu1 %v203_v38 }
 0x22c   :  { %v202_v39 = vmul.f32 %v200_v37, %v200_v37 }
 0x22e   :  { %v206_v40 = vsel %vm56_vm1, %v202_v39, 0.0 }
 0x22f   :  { %207 = vadd.xlane.f32.xlu1 %v206_v40 }
 0x2b4   :  { %v205_v41 = vpop.xlane.xlu1 %204 }
 0x2b5   :  { %v209_v42 = vmul.f32 0.03125, %v205_v41 }
 0x2b7   :  { %v211_v43 = vadd.f32 1e-05, %v209_v42 }
 0x2b8   :  { %v208_v44 = vpop.xlane.xlu1 %207 }
 0x2b9   :  { %302 = vrsqrt.f32 %v211_v43  ;;  %v210_v45 = vmul.f32 0.03125, %v208_v44 }
 0x2bb   :  { %v212_v46 = vadd.f32 1e-05, %v210_v45 }
 0x2bd   :  { %304 = vrsqrt.f32 %v212_v46 }
 0x2c6   :  { %v303_v47 = vpop.eup %302 }
 0x2c7   :  { %v215_v49 = vmul.f32 %v303_v47, %v199_v33 }
 0x2c9   :  { %v223_v51 = vmul.f32 %v261_v48, %v215_v49 }
 0x2ca   :  { %v305_v52 = vpop.eup %304 }
 0x2cb   :  { %v216_v53 = vmul.f32 %v305_v52, %v200_v37  ;;  %v231_v54 = vadd.f32 %v262_v50, %v223_v51 }
 0x2cd   :  { %v224_v55 = vmul.f32 %v261_v48, %v216_v53  ;;  %233 = vst.msk [vmem:[#allocation2] sm:$0xff] %vm56_vm1, %v231_v54 }
 0x2cf   :  { %v232_v56 = vadd.f32 %v262_v50, %v224_v55 }
 0x2d1   :  { %234 = vst.msk [vmem:[#allocation2 + $0x8] sm:$0xff] %vm56_vm1, %v232_v56 }
 0x2d2   :  { %317 = shalt.err (!%p314_p4)
}
 0x2d3   :  { %s331_s5 = smov 128   ;;  %s332_s6 = smov 8  }
 0x2d4   :  { %246 = dma.vmem_to_hbm [thread:$0]  %s241_s21, 256, %s426_s7, [#allocation3], %s331_s5, %s331_s5, %s332_s6  }
 0x2d5   :  { %326 = dma.done.wait [#allocation3], 256  }
 0x2d6   :  { %327 = vsyncadd [#allocation3], 4294967040 }
 0x2d7   :  { %250 = vsyncpa [#allocation3], 1 }

// kernel: tpu_custom_call.1
= control target key start
LH: loop header
LB: loop body
LE: loop exit
PB: predicated region body
PF: predicated region fallthrough
CT: control target
= control target key end

     0   :  { %v328_v1 = vmov 0.0   ;;  %vm329_vm0 = vmmov 0   ;;  %vm56_vm1 = vcmask 261120   ;;  %s419_s0 = inlined_call_operand.vmem [shape: f32[16,32], index: 0, kind: input, shape index: {}]   ;;  %s420_s1 = inlined_call_operand.vmem [shape: bf16[32,64], index: 1, kind: input, shape index: {}]   ;;  %s421_s2 = inlined_call_operand.vmem [shape: f32[1,64], index: 2, kind: input, shape index: {}]   ;;  %s422_s3 = inlined_call_operand.vmem [shape: bf16[64,32], index: 3, kind: input, shape index: {}]   ;;  %s423_s4 = inlined_call_operand.vmem [shape: f32[1,32], index: 4, kind: input, shape index: {}]   ;;  %s424_s5 = inlined_call_operand.vmem [shape: f32[1,32], index: 5, kind: input, shape index: {}]   ;;  %s425_s6 = inlined_call_operand.vmem [shape: f32[1,32], index: 6, kind: input, shape index: {}]   ;;  %s426_s7 = inlined_call_operand.hbm [shape: f32[16,32], index: 7, kind: output, shape index: {}]  }
   0x1   :  { %v296_v0 = vld [vmem:[%s420_s1 + $0x8] sm:$0xff]   ;;  %271 = vmatprep.subr.bf16.mxu0 %v328_v1  ;;  %v297_v2 = vld [vmem:[%s420_s1] sm:$0xff]   ;;  %279 = vmatprep.subr.bf16.mxu1 %v328_v1  ;;  %v298_v5 = vld [vmem:[%s422_s3 + $0x18] sm:$0xff]  }
   0x2   :  { %272 = vmatpush3.bf16.msra.mxu0 %v296_v0  ;;  %275 = vmatprep.mubr.msk.bf16.mxu0 %vm329_vm0, %v328_v1  ;;  %v28_v3 = vld [vmem:[%s419_s0] sm:$0xff]  ;;  %v29_v4 = vld [vmem:[%s419_s0 + $0x8] sm:$0xff] }
   0x3   :  { %273 = vmatprep.subr.bf16.mxu0 %v328_v1  ;;  %287 = vmatprep.mubr.msk.bf16.mxu1 %vm329_vm0, %v328_v1  ;;  %v32_v6 = vpack.c.bf16 %v29_v4, %v28_v3 }
   0x4   :  { %280 = vmatpush3.bf16.msra.mxu1 %v298_v5 }
   0x5   :  { %281 = vmatprep.subr.bf16.mxu1 %v328_v1 }
   0x6   :  { %274 = vmatpush3.bf16.msra.mxu0 %v297_v2 }
   0x7   :  { %12 = vsyncpa [#allocation3], 0  ;;  %v299_v7 = vld [vmem:[%s422_s3 + $0x10] sm:$0xff]   ;;  %v300_v8 = vld [vmem:[%s422_s3 + $0x8] sm:$0xff]   ;;  %vm143_vm2 = vcmask 523264   ;;  %s330_s20 = smov [#allocation2]  }
   0x8   :  { %282 = vmatpush3.bf16.msra.mxu1 %v299_v7  ;;  %v301_v9 = vld [vmem:[%s422_s3] sm:$0xff]   ;;  %s240_s21 = sshll.u32 %s330_s20, 4  ;;  %s241_s21 = int_to_ptr.vmem [resolvable:$true] %s240_s21 }
   0x9   :  { %276 = vmatmul.mubr.msk.bf16.vlgmr.msra.gmra.mxu0 %vm56_vm1, %v32_v6  ;;  %283 = vmatprep.subr.bf16.mxu1 %v328_v1  ;;  %v251_v10 = vld [vmem:[%s421_s2] ss:$0 sm:$0xff]  ;;  %s306_s22 = scalar_lea.vmem %s241_s21, 256  ;;  %p311_p1 = scmp.lt.s32.totalorder %s241_s21, %s241_s21 }
   0xa   :  { %v255_v20 = vld [vmem:[%s423_s4] ss:$0 sm:$0xff]  ;;  %p307_p0 = scmp.ne.s32.totalorder %s241_s21, %s306_s22  ;;  %p312_p2 = scmp.lt.s32.totalorder %s306_s22, %s306_s22 }
   0xb   :  { %v261_v48 = vld [vmem:[%s424_s5] ss:$0 sm:$0xff] }
   0xc   :  { %284 = vmatpush3.bf16.msra.mxu1 %v300_v8  ;;  %v262_v50 = vld [vmem:[%s425_s6] ss:$0 sm:$0xff]  ;;  %p313_p3 = por %p312_p2, %p311_p1 }
   0xd   :  { %285 = vmatprep.subr.bf16.mxu1 %v328_v1 }
   0xe   :  { %p314_p4 = pnand %p313_p3, %p307_p0 }
  0x10   :  { %286 = vmatpush3.bf16.msra.mxu1 %v301_v9 }
  0xc9   :  { %v94_v11 = vpop.f32.mrf.mxu0 }
  0xca   :  { %v95_v13 = vadd.f32 %v251_v10, %v94_v11 }
  0xcb   :  { %v277_v12 = vpop.f32.mrf.mxu0 }
  0xcc   :  { %v101_v17 = vmax.f32 %v95_v13, 0.0 }
  0xcd   :  { %v97_v14 = vpop.f32.mrf.mxu0 }
  0xce   :  { %v98_v15 = vadd.f32 %v251_v10, %v97_v14 }
  0xcf   :  { %v278_v16 = vpop.f32.mrf.mxu0 }
  0xd0   :  { %v102_v18 = vmax.f32 %v98_v15, 0.0 }
  0xd2   :  { %v103_v19 = vpack.c.bf16 %v102_v18, %v101_v17 }
  0xd4   :  { %288 = vmatmul.mubr.msk.bf16.vlgmr.msra.gmra.mxu1 %vm143_vm2, %v103_v19 }
 0x194   :  { %v181_v21 = vpop.f32.mrf.mxu1 }
 0x195   :  { %v182_v22 = vadd.f32 %v255_v20, %v181_v21 }
 0x196   :  { %v289_v23 = vpop.f32.mrf.mxu1 }
 0x197   :  { %v188_v24 = vadd.f32 %v182_v22, %v28_v3 }
 0x198   :  { %v184_v25 = vpop.f32.mrf.mxu1 }
 0x199   :  { %v185_v26 = vadd.f32 %v255_v20, %v184_v25  ;;  %v190_v27 = vsel %vm56_vm1, %v188_v24, 0.0 }
 0x19a   :  { %191 = vadd.xlane.f32.xlu0 %v190_v27  ;;  %v290_v28 = vpop.f32.mrf.mxu1 }
 0x19b   :  { %v189_v29 = vadd.f32 %v185_v26, %v29_v4 }
 0x19d   :  { %v193_v30 = vsel %vm56_vm1, %v189_v29, 0.0 }
 0x19e   :  { %194 = vadd.xlane.f32.xlu0 %v193_v30 }
 0x223   :  { %v192_v31 = vpop.xlane.xlu0 %191 }
 0x224   :  { %v197_v32 = vmul.f32 0.03125, %v192_v31 }
 0x226   :  { %v199_v33 = vsub.f32 %v188_v24, %v197_v32 }
 0x227   :  { %v195_v34 = vpop.xlane.xlu0 %194 }
 0x228   :  { %v198_v35 = vmul.f32 0.03125, %v195_v34  ;;  %v201_v36 = vmul.f32 %v199_v33, %v199_v33 }
 0x22a   :  { %v200_v37 = vsub.f32 %v189_v29, %v198_v35  ;;  %v203_v38 = vsel %vm56_vm1, %v201_v36, 0.0 }
 0x22b   :  { %204 = vadd.xlane.f32.xlu1 %v203_v38 }
 0x22c   :  { %v202_v39 = vmul.f32 %v200_v37, %v200_v37 }
 0x22e   :  { %v206_v40 = vsel %vm56_vm1, %v202_v39, 0.0 }
 0x22f   :  { %207 = vadd.xlane.f32.xlu1 %v206_v40 }
 0x2b4   :  { %v205_v41 = vpop.xlane.xlu1 %204 }
 0x2b5   :  { %v209_v42 = vmul.f32 0.03125, %v205_v41 }
 0x2b7   :  { %v211_v43 = vadd.f32 1e-05, %v209_v42 }
 0x2b8   :  { %v208_v44 = vpop.xlane.xlu1 %207 }
 0x2b9   :  { %302 = vrsqrt.f32 %v211_v43  ;;  %v210_v45 = vmul.f32 0.03125, %v208_v44 }
 0x2bb   :  { %v212_v46 = vadd.f32 1e-05, %v210_v45 }
 0x2bd   :  { %304 = vrsqrt.f32 %v212_v46 }
 0x2c6   :  { %v303_v47 = vpop.eup %302 }
 0x2c7   :  { %v215_v49 = vmul.f32 %v303_v47, %v199_v33 }
 0x2c9   :  { %v223_v51 = vmul.f32 %v261_v48, %v215_v49 }
 0x2ca   :  { %v305_v52 = vpop.eup %304 }
 0x2cb   :  { %v216_v53 = vmul.f32 %v305_v52, %v200_v37  ;;  %v231_v54 = vadd.f32 %v262_v50, %v223_v51 }
 0x2cd   :  { %v224_v55 = vmul.f32 %v261_v48, %v216_v53  ;;  %233 = vst.msk [vmem:[#allocation2] sm:$0xff] %vm56_vm1, %v231_v54 }
 0x2cf   :  { %v232_v56 = vadd.f32 %v262_v50, %v224_v55 }
 0x2d1   :  { %234 = vst.msk [vmem:[#allocation2 + $0x8] sm:$0xff] %vm56_vm1, %v232_v56 }
 0x2d2   :  { %317 = shalt.err (!%p314_p4)
}
 0x2d3   :  { %s331_s5 = smov 128   ;;  %s332_s6 = smov 8  }
 0x2d4   :  { %246 = dma.vmem_to_hbm [thread:$0]  %s241_s21, 256, %s426_s7, [#allocation3], %s331_s5, %s331_s5, %s332_s6  }
 0x2d5   :  { %326 = dma.done.wait [#allocation3], 256  }
 0x2d6   :  { %327 = vsyncadd [#allocation3], 4294967040 }
 0x2d7   :  { %250 = vsyncpa [#allocation3], 1 }

</bundles_post_ra>
